<compile_context>
chip_gen: v7x
topology: tpu7x:2x2x1
jax: 0.10.0
libtpu: 0.0.40
codegen_flags: <defaults>
</compile_context>

<pallas_src>
import jax
import jax.numpy as jnp
import numpy as np
from jax.experimental import pallas as pl
from jax.experimental.pallas import tpu as pltpu


def _round_up(n: int, m: int) -> int:
    return ((n + m - 1) // m) * m


def mlp1_fused_kernel(x_ref, wf_ref, bf_ref, o_ref):
    # y = x @ Wf + bf   (Wf folds both linears; bf folds both biases)
    y = jnp.dot(x_ref[...], wf_ref[...],
                preferred_element_type=jnp.float32) + bf_ref[...]
    o_ref[...] = y.astype(o_ref.dtype)


def mlp1_prepare(w1, b1, w2, b2, *, dtype=jnp.float32):
    """Init-time parameter prep (do NOT call per forward step).

    w1: [D, 32], b1: [D], w2: [D, D] (orthogonal), b2: [D]
    Returns (wf [32, D], bf [1, D]).  No lane padding — the output array is
    itself narrow, so writing only D columns minimizes HBM bytes.
    """
    # (x @ W1^T + b1) @ W2^T + b2  ==  x @ (W1^T @ W2^T) + (b1 @ W2^T + b2)
    wf = (w1.T @ w2.T).astype(dtype)            # [32, D]
    bf = (b1 @ w2.T + b2).astype(dtype)[None]   # [1, D]
    return wf, bf


def mlp1_forward(x, wf, bf, *, max_tile_rows=2048):
    """x: [B, 32] -> [B, D]. wf/bf come from mlp1_prepare."""
    B, K = x.shape
    D = wf.shape[1]

    # Batch tile: large enough to amortize per-step overhead, rows a multiple
    # of 8 (sublane).  Aim for at least 2 grid steps so the "parallel" axis
    # can shard across both v7x TensorCores when B is small/medium.
    TB = min(max_tile_rows, max(8, _round_up(pl.cdiv(B, 2), 8)))
    grid = (pl.cdiv(B, TB),)   # ragged last block handled by Pallas (no host pad)

    out = pl.pallas_call(
        mlp1_fused_kernel,
        out_shape=jax.ShapeDtypeStruct((B, D), x.dtype),
        grid=grid,
        in_specs=[
            pl.BlockSpec((TB, K), lambda i: (i, 0)),   # activations: batch-tiled
            pl.BlockSpec((K, D), lambda i: (0, 0)),    # fused weight: resident
            pl.BlockSpec((1, D), lambda i: (0, 0)),    # fused bias: resident
        ],
        out_specs=pl.BlockSpec((TB, D), lambda i: (i, 0)),
        compiler_params=pltpu.CompilerParams(
            dimension_semantics=("parallel",)),        # megacore on v7x
    )(x, wf, bf)
    return out


if __name__ == "__main__":
    key = jax.random.PRNGKey(0)
    k_x, k_w1, k_b1, k_w2, k_b2 = jax.random.split(key, 5)

    B = 8            # batch
    IN = 32          # fixed by the module: nn.Linear(32, output_shape)
    D = 16           # output_shape kwarg

    x = jax.random.normal(k_x, (B, IN), dtype=jnp.float32)

    # layer1: nn.Linear(32, D) -> weight [D, 32], bias [D]
    bound1 = 1.0 / np.sqrt(IN)
    w1 = jax.random.uniform(k_w1, (D, IN), minval=-bound1, maxval=bound1,
                            dtype=jnp.float32)
    b1 = jax.random.uniform(k_b1, (D,), minval=-bound1, maxval=bound1,
                            dtype=jnp.float32)

    # layer2: orthogonal(nn.Linear(D, D)) -> orthogonal [D, D] weight, bias [D]
    w2_raw = jax.random.normal(k_w2, (D, D), dtype=jnp.float32)
    q, r = jnp.linalg.qr(w2_raw)
    w2 = q * jnp.sign(jnp.diag(r))[None, :]     # orthogonal, deterministic
    bound2 = 1.0 / np.sqrt(D)
    b2 = jax.random.uniform(k_b2, (D,), minval=-bound2, maxval=bound2,
                            dtype=jnp.float32)

    # Init-time prep (fusion), then the Pallas forward.
    wf, bf = mlp1_prepare(w1, b1, w2, b2)
    out = mlp1_forward(x, wf, bf)
    out = jax.block_until_ready(out)

    # sanity check against plain-JAX reference of the unfused math
    ref = (x @ w1.T + b1) @ w2.T + b2
    np.testing.assert_allclose(np.asarray(out), np.asarray(ref),
                               rtol=1e-5, atol=1e-5)

    # also exercise a ragged / multi-tile batch (B not a multiple of the tile)
    B2 = 1037
    x2 = jax.random.normal(jax.random.PRNGKey(1), (B2, IN), dtype=jnp.float32)
    out2 = jax.block_until_ready(mlp1_forward(x2, wf, bf))
    ref2 = (x2 @ w1.T + b1) @ w2.T + b2
    np.testing.assert_allclose(np.asarray(out2), np.asarray(ref2),
                               rtol=1e-5, atol=1e-5)

    print("KERNEL_OK")
</pallas_src>

<mosaic_0001>
module attributes {stable_mosaic.version = 11 : i64} {
  func.func @mlp1_fused_kernel(%arg0: i32, %arg1: memref<8x32xf32, #tpu.memory_space<vmem>>, %arg2: memref<32x16xf32, #tpu.memory_space<vmem>>, %arg3: memref<1x16xf32, #tpu.memory_space<vmem>>, %arg4: memref<8x16xf32, #tpu.memory_space<vmem>>) attributes {dimension_semantics = [#tpu.dimension_semantics<parallel>], iteration_bounds = array<i64: 1>, scalar_prefetch = 0 : i64, scratch_operands = 0 : i64, tpu.core_type = #tpu.core_type<tc>, window_params = [{transform_indices = @transform_0, window_bounds = array<i64: 8, 32>}, {pipeline_mode = #tpu.pipeline_mode<synchronous>, transform_indices = @transform_1, window_bounds = array<i64: 32, 16>}, {pipeline_mode = #tpu.pipeline_mode<synchronous>, transform_indices = @transform_2, window_bounds = array<i64: 1, 16>}, {transform_indices = @transform_3, window_bounds = array<i64: 8, 16>}]} {
    %c0 = arith.constant 0 : index
    %c0_0 = arith.constant 0 : index
    %0 = vector.load %arg1[%c0, %c0_0] : memref<8x32xf32, #tpu.memory_space<vmem>>, vector<8x32xf32>
    %c0_1 = arith.constant 0 : index
    %c0_2 = arith.constant 0 : index
    %1 = vector.load %arg2[%c0_1, %c0_2] : memref<32x16xf32, #tpu.memory_space<vmem>>, vector<32x16xf32>
    %cst = arith.constant dense<0.000000e+00> : vector<8x16xf32>
    %2 = tpu.matmul %0, %1, %cst {dimension_numbers = #tpu.dot_dimension_numbers<[1], [0], [0], [1], [0, 0, 1, 1], [], []>} : vector<8x32xf32>, vector<32x16xf32>, vector<8x16xf32> -> vector<8x16xf32>
    %c0_3 = arith.constant 0 : index
    %c0_4 = arith.constant 0 : index
    %3 = vector.load %arg3[%c0_3, %c0_4] : memref<1x16xf32, #tpu.memory_space<vmem>>, vector<1x16xf32>
    %4 = vector.broadcast %3 : vector<1x16xf32> to vector<8x16xf32>
    %5 = arith.addf %2, %4 : vector<8x16xf32>
    %c0_5 = arith.constant 0 : index
    %c0_6 = arith.constant 0 : index
    %6 = vector.load %arg4[%c0_5, %c0_6] : memref<8x16xf32, #tpu.memory_space<vmem>>, vector<8x16xf32>
    tpu.vector_store %arg4[%c0_5, %c0_6], %5 {strides = array<i32>} : memref<8x16xf32, #tpu.memory_space<vmem>>, vector<8x16xf32>,
    return
  }
  func.func @transform_0(%arg0: i32) -> (i32, i32) {
    %c0_i32 = arith.constant 0 : i32
    %c0_i32_0 = arith.constant 0 : i32
    return %arg0, %c0_i32 : i32, i32
  }
  func.func @transform_1(%arg0: i32) -> (i32, i32) {
    %c0_i32 = arith.constant 0 : i32
    %c0_i32_0 = arith.constant 0 : i32
    %c0_i32_1 = arith.constant 0 : i32
    return %c0_i32, %c0_i32_0 : i32, i32
  }
  func.func @transform_2(%arg0: i32) -> (i32, i32) {
    %c0_i32 = arith.constant 0 : i32
    %c0_i32_0 = arith.constant 0 : i32
    %c0_i32_1 = arith.constant 0 : i32
    return %c0_i32, %c0_i32_0 : i32, i32
  }
  func.func @transform_3(%arg0: i32) -> (i32, i32) {
    %c0_i32 = arith.constant 0 : i32
    %c0_i32_0 = arith.constant 0 : i32
    return %arg0, %c0_i32 : i32, i32
  }
}

</mosaic_0001>

<bundles_post_ra>
// kernel: tpu_custom_call.1
= control target key start
LH: loop header
LB: loop body
LE: loop exit
PB: predicated region body
PF: predicated region fallthrough
CT: control target
= control target key end

     0   :  { %v169_v3 = vmov 0.0|0.0   ;;  %vm170_vm0 = vmmov 0   ;;  %v171_v6 = vmov 0.0   ;;  %s223_s0 = inlined_call_operand.vmem [shape: f32[8,32], index: 0, kind: input, shape index: {}]   ;;  %s224_s1 = inlined_call_operand.vmem [shape: f32[32,16], index: 1, kind: input, shape index: {}]   ;;  %s225_s2 = inlined_call_operand.vmem [shape: f32[1,16], index: 2, kind: input, shape index: {}]   ;;  %s226_s3 = inlined_call_operand.hbm [shape: f32[8,16], index: 3, kind: output, shape index: {}]  }
   0x1   :  { %v16_v0 = vld [vmem:[%s224_s1] sm:$0xff]  ;;  %v17_v1 = vld [vmem:[%s224_s1 + $0x8] sm:$0xff]  ;;  %v18_v2 = vld [vmem:[%s224_s1 + $0x10] sm:$0xff]  ;;  %135 = vmatprep.subr.bf16.mxu0 %v169_v3  ;;  %132 = vmatprep.mubr.msk.f32.mxu0 %vm170_vm0, %v171_v6 }
   0x2   :  { %v136_v4 = vpack.c.bf16 %v17_v1, %v16_v0  ;;  %v19_v5 = vld [vmem:[%s224_s1 + $0x18] sm:$0xff] }
   0x3   :  { %8 = vsyncpa [#allocation3], 0  ;;  %v139_v7 = vpack.c.bf16 %v19_v5, %v18_v2  ;;  %v15_v8 = vld [vmem:[%s223_s0] sm:$0xff]  ;;  %vm27_vm1 = vcmask 261120   ;;  %s172_s24 = smov [#allocation2]   ;;  %vm101_vm2 = vcmask 130048  }
   0x4   :  { %137 = vmatpush3.bf16.msra.mxu0 %v136_v4  ;;  %v117_v9 = vld [vmem:[%s225_s2] ss:$0 sm:$0xff]  ;;  %s109_s1 = sshll.u32 %s172_s24, 4  ;;  %s110_s1 = int_to_ptr.vmem [resolvable:$true] %s109_s1 }
   0x5   :  { %138 = vmatprep.subr.bf16.mxu0 %v169_v3  ;;  %s145_s25 = scalar_lea.vmem %s110_s1, 128  ;;  %p150_p1 = scmp.lt.s32.totalorder %s110_s1, %s110_s1 }
   0x6   :  { %p146_p0 = scmp.ne.s32.totalorder %s110_s1, %s145_s25  ;;  %p151_p2 = scmp.lt.s32.totalorder %s145_s25, %s145_s25 }
   0x8   :  { %140 = vmatpush3.bf16.msra.mxu0 %v139_v7  ;;  %p152_p3 = por %p151_p2, %p150_p1 }
   0xa   :  { %p153_p4 = pnand %p152_p3, %p146_p0 }
   0xb   :  { %133 = vmatmul.mubr.msk.f32.vlgmr.msra.gmra.mrb[0].mxu0 %vm27_vm1, %v15_v8 }
  0xde   :  { %v97_v10 = vpop.f32.mrb[0].mxu0 }
  0xdf   :  { %v98_v11 = vadd.f32 %v117_v9, %v97_v10  ;;  %v134_v12 = vpop.f32.mrb[1].mxu0 }
  0xe1   :  { %102 = vst.msk [vmem:[#allocation2] sm:$0xff] %vm101_vm2, %v98_v11 }
  0xe2   :  { %156 = shalt.err (!%p153_p4)
}
  0xe3   :  { %s157_s27 = scalar_lea.hbm %s226_s3, 128 }
  0xe4   :  { %p158_p5 = scmp.ne.s32.totalorder %s226_s3, %s157_s27  ;;  %p161_p6 = scmp.lt.u32.totalorder %s157_s27, %s226_s3 }
  0xe6   :  { %p163_p7 = pnand %p161_p6, %p158_p5 }
  0xe8   :  { %166 = shalt.err (!%p163_p7)
}
  0xe9   :  { %112 = dma.vmem_to_hbm [thread:$0]  %s110_s1, 128, %s226_s3, [#allocation3]  }
  0xea   :  { %167 = dma.done.wait [#allocation3], 128  }
  0xeb   :  { %168 = vsyncadd [#allocation3], 4294967168 }
  0xec   :  { %116 = vsyncpa [#allocation3], 1 }

</bundles_post_ra>
